<compile_context>
chip_gen: v7x
topology: tpu7x:2x2x1
jax: 0.10.0
libtpu: 0.0.40
codegen_flags: <defaults>
</compile_context>

<pallas_src>
import functools

import jax
import jax.numpy as jnp
from jax.experimental import pallas as pl
from jax.experimental.pallas import tpu as pltpu

HIDDEN = 159        # matches torch.nn.Linear(in_size, 159)
HIDDEN_PAD = 256    # zero-padded hidden width (multiple of 128)


def _round_up(v, m):
    return (v + m - 1) // m * m


def _mlp_kernel(x_ref, w1_ref, b1_ref, w2_ref, b2_ref, o_ref):
    # h = relu(x_tile @ W1 + b1); f32 accumulation on the MXU.
    h = jnp.dot(x_ref[...], w1_ref[...], preferred_element_type=jnp.float32)
    h = jnp.maximum(h + b1_ref[...], 0.0)
    # y = h @ W2 + b2 -> narrow (tile_n, out_size) store (last dim == full dim).
    y = jnp.dot(h, w2_ref[...], preferred_element_type=jnp.float32)
    o_ref[...] = (y + b2_ref[...]).astype(o_ref.dtype)


def pad_params(w1, b1, w2, b2):
    """Zero-pad the hidden dim 159 -> 256 ONCE (outside the per-call path).

    ReLU(0) = 0 and zero weight rows/cols contribute 0, so the math is exact.
    """
    in_size = w1.shape[0]
    out_size = w2.shape[1]
    assert w1.shape == (in_size, HIDDEN) and b1.shape == (1, HIDDEN)
    assert w2.shape == (HIDDEN, out_size) and b2.shape == (1, out_size)
    w1_p = jnp.zeros((in_size, HIDDEN_PAD), jnp.float32).at[:, :HIDDEN].set(w1)
    b1_p = jnp.zeros((1, HIDDEN_PAD), jnp.float32).at[:, :HIDDEN].set(b1)
    w2_p = jnp.zeros((HIDDEN_PAD, out_size), jnp.float32).at[:HIDDEN, :].set(w2)
    b2_p = b2.astype(jnp.float32)
    return w1_p, b1_p, w2_p, b2_p


@functools.partial(jax.jit, static_argnames=("tile_n",))
def neuralnet_forward(x, w1_p, b1_p, w2_p, b2_p, *, tile_n=2048):
    """Pallas equivalent of NeuralNet.forward: (N, in_size) -> (N, out_size)."""
    n, in_size = x.shape
    out_size = w2_p.shape[1]
    assert w1_p.shape == (in_size, HIDDEN_PAD)
    assert b1_p.shape == (1, HIDDEN_PAD)
    assert w2_p.shape == (HIDDEN_PAD, out_size)
    assert b2_p.shape == (1, out_size)

    # ---- row-tile sizing (all static: shapes are known at trace time) ----
    # (a) VMEM budget: 2-deep buffered x/out tiles + resident weights must fit
    #     v5e's 16 MiB default scoped VMEM (also safe on v7x's 64 MiB physical).
    weight_bytes = 4 * (in_size * HIDDEN_PAD + HIDDEN_PAD * out_size
                        + HIDDEN_PAD + out_size)
    stream_budget = max(4 * 1024 * 1024, 12 * 1024 * 1024 - weight_bytes)
    bytes_per_row = 4 * 2 * (in_size + out_size)      # double-buffered x + out
    cap_rows = max(8, (stream_budget // bytes_per_row) // 8 * 8)
    # (b) at least 2 grid steps when n allows it, so v7x's second TensorCore
    #     gets work via the "parallel" axis (no-op on single-TC v5e/v6e).
    half_rows = max(8, _round_up(pl.cdiv(n, 2), 8))
    tile_n = max(8, min(_round_up(tile_n, 8), cap_rows, half_rows))

    grid = (pl.cdiv(n, tile_n),)   # ragged: Pallas masks the partial last tile

    est_vmem = tile_n * bytes_per_row + weight_bytes
    vmem_limit = None
    if est_vmem > 14 * 1024 * 1024:   # only bump when the default would be tight
        vmem_limit = min(_round_up(est_vmem + (2 << 20), 1 << 20), 48 << 20)

    return pl.pallas_call(
        _mlp_kernel,
        out_shape=jax.ShapeDtypeStruct((n, out_size), x.dtype),
        grid_spec=pltpu.PrefetchScalarGridSpec(
            num_scalar_prefetch=0,
            grid=grid,
            in_specs=[
                # x tiled over rows (double-buffered); weights/biases use
                # constant (0,0) index maps so they stay VMEM-resident.
                pl.BlockSpec((tile_n, in_size), lambda i: (i, 0)),
                pl.BlockSpec((in_size, HIDDEN_PAD), lambda i: (0, 0)),
                pl.BlockSpec((1, HIDDEN_PAD), lambda i: (0, 0)),
                pl.BlockSpec((HIDDEN_PAD, out_size), lambda i: (0, 0)),
                pl.BlockSpec((1, out_size), lambda i: (0, 0)),
            ],
            out_specs=pl.BlockSpec((tile_n, out_size), lambda i: (i, 0)),
        ),
        compiler_params=pltpu.CompilerParams(
            # Independent row tiles -> shard across TensorCores on v7x.
            dimension_semantics=("parallel",),
            vmem_limit_bytes=vmem_limit,
        ),
    )(x, w1_p, b1_p, w2_p, b2_p)


def init_params(key, in_size, out_size):
    """PyTorch-style uniform init U(-1/sqrt(fan_in), 1/sqrt(fan_in))."""
    k1, k2, k3, k4 = jax.random.split(key, 4)
    bound1 = 1.0 / jnp.sqrt(in_size)
    bound2 = 1.0 / jnp.sqrt(HIDDEN)
    w1 = jax.random.uniform(k1, (in_size, HIDDEN), jnp.float32, -bound1, bound1)
    b1 = jax.random.uniform(k2, (1, HIDDEN), jnp.float32, -bound1, bound1)
    w2 = jax.random.uniform(k3, (HIDDEN, out_size), jnp.float32, -bound2, bound2)
    b2 = jax.random.uniform(k4, (1, out_size), jnp.float32, -bound2, bound2)
    return w1, b1, w2, b2


if __name__ == "__main__":
    # Small shapes consistent with forward(): x is (N, in_size).
    # N=37 deliberately exercises the ragged (masked) last grid tile.
    N, IN_SIZE, OUT_SIZE = 37, 32, 4

    key = jax.random.PRNGKey(0)
    kx, kp = jax.random.split(key)
    x = jax.random.normal(kx, (N, IN_SIZE), jnp.float32)
    w1, b1, w2, b2 = init_params(kp, IN_SIZE, OUT_SIZE)

    padded = pad_params(w1, b1, w2, b2)        # hoisted: pad once, reuse
    y = neuralnet_forward(x, *padded)
    y = jax.block_until_ready(y)

    # Pure-JAX f32 reference (same math as the PyTorch Sequential).
    y_ref = jnp.maximum(x @ w1 + b1, 0.0) @ w2 + b2
    assert y.shape == (N, OUT_SIZE)
    assert jnp.allclose(y, y_ref, atol=1e-2, rtol=1e-2), (
        float(jnp.max(jnp.abs(y - y_ref))))

    # TODO(synk): NeuralNet.step (SGD+momentum training step) is host-side
    # optimizer logic, not implemented as a kernel.
    print("KERNEL_OK")
</pallas_src>

<mosaic_0001>
module attributes {stable_mosaic.version = 11 : i64} {
  func.func @_mlp_kernel(%arg0: i32, %arg1: memref<24x32xf32, #tpu.memory_space<vmem>>, %arg2: memref<32x256xf32, #tpu.memory_space<vmem>>, %arg3: memref<1x256xf32, #tpu.memory_space<vmem>>, %arg4: memref<256x4xf32, #tpu.memory_space<vmem>>, %arg5: memref<1x4xf32, #tpu.memory_space<vmem>>, %arg6: memref<24x4xf32, #tpu.memory_space<vmem>>) attributes {dimension_semantics = [#tpu.dimension_semantics<parallel>], iteration_bounds = array<i64: 2>, scalar_prefetch = 0 : i64, scratch_operands = 0 : i64, tpu.core_type = #tpu.core_type<tc>, window_params = [{transform_indices = @transform_0, window_bounds = array<i64: 24, 32>}, {pipeline_mode = #tpu.pipeline_mode<synchronous>, transform_indices = @transform_1, window_bounds = array<i64: 32, 256>}, {pipeline_mode = #tpu.pipeline_mode<synchronous>, transform_indices = @transform_2, window_bounds = array<i64: 1, 256>}, {pipeline_mode = #tpu.pipeline_mode<synchronous>, transform_indices = @transform_3, window_bounds = array<i64: 256, 4>}, {pipeline_mode = #tpu.pipeline_mode<synchronous>, transform_indices = @transform_4, window_bounds = array<i64: 1, 4>}, {transform_indices = @transform_5, window_bounds = array<i64: 24, 4>}]} {
    %c0 = arith.constant 0 : index
    %c0_0 = arith.constant 0 : index
    %0 = vector.load %arg1[%c0, %c0_0] : memref<24x32xf32, #tpu.memory_space<vmem>>, vector<24x32xf32>
    %c0_1 = arith.constant 0 : index
    %c0_2 = arith.constant 0 : index
    %1 = vector.load %arg2[%c0_1, %c0_2] : memref<32x256xf32, #tpu.memory_space<vmem>>, vector<32x256xf32>
    %cst = arith.constant dense<0.000000e+00> : vector<24x256xf32>
    %2 = tpu.matmul %0, %1, %cst {dimension_numbers = #tpu.dot_dimension_numbers<[1], [0], [0], [1], [0, 0, 1, 1], [], []>} : vector<24x32xf32>, vector<32x256xf32>, vector<24x256xf32> -> vector<24x256xf32>
    %c0_3 = arith.constant 0 : index
    %c0_4 = arith.constant 0 : index
    %3 = vector.load %arg3[%c0_3, %c0_4] : memref<1x256xf32, #tpu.memory_space<vmem>>, vector<1x256xf32>
    %4 = vector.broadcast %3 : vector<1x256xf32> to vector<24x256xf32>
    %5 = arith.addf %2, %4 : vector<24x256xf32>
    %cst_5 = arith.constant 0.000000e+00 : f32
    %6 = vector.broadcast %cst_5 : f32 to vector<24x256xf32>
    %7 = arith.maximumf %5, %6 : vector<24x256xf32>
    %c0_6 = arith.constant 0 : index
    %c0_7 = arith.constant 0 : index
    %8 = vector.load %arg4[%c0_6, %c0_7] : memref<256x4xf32, #tpu.memory_space<vmem>>, vector<256x4xf32>
    %cst_8 = arith.constant dense<0.000000e+00> : vector<24x4xf32>
    %9 = tpu.matmul %7, %8, %cst_8 {dimension_numbers = #tpu.dot_dimension_numbers<[1], [0], [0], [1], [0, 0, 1, 1], [], []>} : vector<24x256xf32>, vector<256x4xf32>, vector<24x4xf32> -> vector<24x4xf32>
    %c0_9 = arith.constant 0 : index
    %c0_10 = arith.constant 0 : index
    %10 = vector.load %arg5[%c0_9, %c0_10] : memref<1x4xf32, #tpu.memory_space<vmem>>, vector<1x4xf32>
    %11 = vector.broadcast %10 : vector<1x4xf32> to vector<24x4xf32>
    %12 = arith.addf %9, %11 : vector<24x4xf32>
    %c0_11 = arith.constant 0 : index
    %c0_12 = arith.constant 0 : index
    %13 = vector.load %arg6[%c0_11, %c0_12] : memref<24x4xf32, #tpu.memory_space<vmem>>, vector<24x4xf32>
    tpu.vector_store %arg6[%c0_11, %c0_12], %12 {strides = array<i32>} : memref<24x4xf32, #tpu.memory_space<vmem>>, vector<24x4xf32>,
    return
  }
  func.func @transform_0(%arg0: i32) -> (i32, i32) {
    %c0_i32 = arith.constant 0 : i32
    %c0_i32_0 = arith.constant 0 : i32
    return %arg0, %c0_i32 : i32, i32
  }
  func.func @transform_1(%arg0: i32) -> (i32, i32) {
    %c0_i32 = arith.constant 0 : i32
    %c0_i32_0 = arith.constant 0 : i32
    %c0_i32_1 = arith.constant 0 : i32
    return %c0_i32, %c0_i32_0 : i32, i32
  }
  func.func @transform_2(%arg0: i32) -> (i32, i32) {
    %c0_i32 = arith.constant 0 : i32
    %c0_i32_0 = arith.constant 0 : i32
    %c0_i32_1 = arith.constant 0 : i32
    return %c0_i32, %c0_i32_0 : i32, i32
  }
  func.func @transform_3(%arg0: i32) -> (i32, i32) {
    %c0_i32 = arith.constant 0 : i32
    %c0_i32_0 = arith.constant 0 : i32
    %c0_i32_1 = arith.constant 0 : i32
    return %c0_i32, %c0_i32_0 : i32, i32
  }
  func.func @transform_4(%arg0: i32) -> (i32, i32) {
    %c0_i32 = arith.constant 0 : i32
    %c0_i32_0 = arith.constant 0 : i32
    %c0_i32_1 = arith.constant 0 : i32
    return %c0_i32, %c0_i32_0 : i32, i32
  }
  func.func @transform_5(%arg0: i32) -> (i32, i32) {
    %c0_i32 = arith.constant 0 : i32
    %c0_i32_0 = arith.constant 0 : i32
    return %arg0, %c0_i32 : i32, i32
  }
}

</mosaic_0001>

<bundles_post_ra>
// kernel: neuralnet_forward.1
= control target key start
LH: loop header
LB: loop body
LE: loop exit
PB: predicated region body
PF: predicated region fallthrough
CT: control target
= control target key end

     0   :  { %s1033_s18 = smov 0   ;;  %s1035_s19 = smov 0   ;;  %s1241_s0 = inlined_call_operand.vmem [shape: f32[37,32], index: 0, kind: input, shape index: {}]   ;;  %s1242_s1 = inlined_call_operand.vmem [shape: f32[32,256], index: 1, kind: input, shape index: {}]   ;;  %s1243_s2 = inlined_call_operand.vmem [shape: f32[1,256], index: 2, kind: input, shape index: {}]   ;;  %s1244_s3 = inlined_call_operand.vmem [shape: f32[256,4], index: 3, kind: input, shape index: {}]   ;;  %s1245_s4 = inlined_call_operand.vmem [shape: f32[1,4], index: 4, kind: input, shape index: {}]   ;;  %s1246_s5 = inlined_call_operand.vmem [shape: f32[37,4], index: 5, kind: output, shape index: {}]  }
   0x1   :  { %s1037_s20 = smov 0  }
   0x2 LB: > { %s1046_s21 = sadd.s32 4294967295, %s968_s20   ;;  %s1048_s22 = sadd.s32 1, %s968_s20   ;;  %s968_s20 = sphi %s1037_s20, %s1250_s20   ;;  %s964_s19 = sphi %s1035_s19, %s1249_s19   ;;  %s960_s18 = sphi %s1033_s18, %s1248_s18  }
   0x3   : > { %s129_s23 = ssub.s32 %s968_s20, %s1048_s22  ;;  %s132_s24 = sadd.s32 1, %s964_s19 }
   0x4   : > { %p130_p0 = scmp.eq.s32.totalorder %s129_s23, 0  ;;  %p142_p1 = scmp.ne.s32.totalorder %s964_s19, %s960_s18 }
   0x5   : > { %p143_p2 = scmp.eq.s32.totalorder %s1046_s21, 1  ;;  %p719_p3 = scmp.ge.s32.totalorder %s968_s20, 1 }
   0x6   : > { %s1056_s25 = scalar_select %p130_p0, %s964_s19, %s132_s24  }
   0x7   : > { %p1058_p4 = por %p143_p2, %p142_p1  ;;  %p196_p5 = scmp.lt.s32.totalorder %s968_s20, 3 }
   0x9   : > { %p197_p6 = pnand %p719_p3, %p196_p5 }
   0xa   : > { %v250_v0 = vld [vmem:[%s1242_s1 + $0x8] sm:$0xff] (!%p197_p6)  ;;  %v252_v1 = vld [vmem:[%s1242_s1 + $0x18] sm:$0xff] (!%p197_p6)  ;;  %v249_v2 = vld [vmem:[%s1242_s1] sm:$0xff] (!%p197_p6)  ;;  %s1072_s8 = smul.u32 (!%p197_p6), 3, %s1046_s21  ;;  %v1002_v7 = vmov (!%p197_p6), 0.0   ;;  %vm269_vm0 = vcmask (!%p197_p6), 261120  }
   0xb   : > { %200 = sbr.rel (%p197_p6) target bundleno = 528 (0x210), region = 40  ;;  %v779_v3 = vpack.c.bf16 (!%p197_p6), %v252_v1, %v250_v0  ;;  %v251_v4 = vld [vmem:[%s1242_s1 + $0x10] sm:$0xff] (!%p197_p6)  ;;  %v254_v5 = vld [vmem:[%s1242_s1 + $0x28] sm:$0xff] (!%p197_p6)  ;;  %v256_v6 = vld [vmem:[%s1242_s1 + $0x38] sm:$0xff] (!%p197_p6)  ;;  %343 = vmatprep.mubr.f32.mxu0 (!%p197_p6), %v1002_v7  ;;  %v259_v0 = vlaneseq (!%p197_p6)  ;;  %s224_s20 = sand.u32 (!%p197_p6), 1, %s960_s18   ;;  %vm487_vm1 = vcmask (!%p197_p6), 31744  }
   0xc   : > { %v781_v8 = vpack.c.bf16 (!%p197_p6), %v251_v4, %v249_v2  ;;  %v783_v9 = vpack.c.bf16 (!%p197_p6), %v256_v6, %v254_v5  ;;  %v253_v10 = vld [vmem:[%s1242_s1 + $0x20] sm:$0xff] (!%p197_p6)  ;;  %v255_v11 = vld [vmem:[%s1242_s1 + $0x30] sm:$0xff] (!%p197_p6)  ;;  %p232_p7 = scmp.lt.s32.totalorder (!%p197_p6), %s1072_s8, 4  ;;  %v385_v13 = vld [vmem:[%s1244_s3 + $0x88] sm:$0xff] (!%p197_p6)  ;;  %s819_s23 = smul.u32 (!%p197_p6), 24, %s224_s20 }
   0xd   : > { %v384_v12 = vld [vmem:[%s1244_s3 + $0x80] sm:$0xff] (!%p197_p6)  ;;  %780 = vmatprep.subr.bf16.mxu0 (!%p197_p6), %v779_v3  ;;  %v369_v15 = vld [vmem:[%s1244_s3 + $0x8] sm:$0xff] (!%p197_p6)  ;;  %v785_v16 = vpack.c.bf16 (!%p197_p6), %v255_v11, %v253_v10  ;;  %v386_v19 = vld [vmem:[%s1244_s3 + $0x90] sm:$0xff] (!%p197_p6)  ;;  %v260_v1 = vshrl.u32 (!%p197_p6), %v259_v0, 7 }
   0xe   : > { %v368_v14 = vld [vmem:[%s1244_s3] sm:$0xff] (!%p197_p6)  ;;  %782 = vmatpush1.bf16.msra.mxu0 (!%p197_p6), %v781_v8  ;;  %v787_v17 = vpack.c.bf16 (!%p197_p6), %v385_v13, %v384_v12  ;;  %v387_v20 = vld [vmem:[%s1244_s3 + $0x98] sm:$0xff] (!%p197_p6)  ;;  %v370_v21 = vld [vmem:[%s1244_s3 + $0x10] sm:$0xff] (!%p197_p6) }
   0xf   : > { %v789_v18 = vpack.c.bf16 (!%p197_p6), %v369_v15, %v368_v14  ;;  %784 = vmatprep.subr.bf16.mxu0 (!%p197_p6), %v783_v9  ;;  %v791_v22 = vpack.c.bf16 (!%p197_p6), %v387_v20, %v386_v19  ;;  %v371_v23 = vld [vmem:[%s1244_s3 + $0x18] sm:$0xff] (!%p197_p6)  ;;  %v388_v24 = vld [vmem:[%s1244_s3 + $0xa0] sm:$0xff] (!%p197_p6)  ;;  %v389_v25 = vld [vmem:[%s1244_s3 + $0xa8] sm:$0xff] (!%p197_p6)  ;;  %v261_v2 = vsub.s32 (!%p197_p6), 0, %v260_v1  ;;  %v265_v4 = vsub.s32 (!%p197_p6), 1, %v260_v1 }
  0x10   : > { %788 = vmatprep.subr.bf16.mxu1 (!%p197_p6), %v787_v17  ;;  %v793_v26 = vpack.c.bf16 (!%p197_p6), %v371_v23, %v370_v21  ;;  %v795_v28 = vpack.c.bf16 (!%p197_p6), %v389_v25, %v388_v24  ;;  %v372_v29 = vld [vmem:[%s1244_s3 + $0x20] sm:$0xff] (!%p197_p6)  ;;  %v373_v30 = vld [vmem:[%s1244_s3 + $0x28] sm:$0xff] (!%p197_p6)  ;;  %v390_v31 = vld [vmem:[%s1244_s3 + $0xb0] sm:$0xff] (!%p197_p6) }
  0x11   : > { %790 = vmatpush3.bf16.msra.mxu1 (!%p197_p6), %v789_v18  ;;  %v391_v32 = vld [vmem:[%s1244_s3 + $0xb8] sm:$0xff] (!%p197_p6)  ;;  %v797_v33 = vpack.c.bf16 (!%p197_p6), %v373_v30, %v372_v29  ;;  %v374_v36 = vld [vmem:[%s1244_s3 + $0x30] sm:$0xff] (!%p197_p6)  ;;  %v392_v38 = vld [vmem:[%s1244_s3 + $0xc0] sm:$0xff] (!%p197_p6) }
  0x12   : > { %s233_s9 = scalar_select %p232_p7, %s1072_s8, 4  ;;  %786 = vmatpush1.bf16.msra.mxu0 %v785_v16  ;;  %792 = vmatprep.subr.bf16.mxu1 %v791_v22  ;;  %v799_v35 = vpack.c.bf16 %v391_v32, %v390_v31  ;;  %v375_v37 = vld [vmem:[%s1244_s3 + $0x38] sm:$0xff]  ;;  %v393_v39 = vld [vmem:[%s1244_s3 + $0xc8] sm:$0xff]  ;;  %v376_v43 = vld [vmem:[%s1244_s3 + $0x40] sm:$0xff] }
  0x13   : > { %v801_v40 = vpack.c.bf16 %v375_v37, %v374_v36  ;;  %v803_v42 = vpack.c.bf16 %v393_v39, %v392_v38  ;;  %v377_v44 = vld [vmem:[%s1244_s3 + $0x48] sm:$0xff]  ;;  %v394_v45 = vld [vmem:[%s1244_s3 + $0xd0] sm:$0xff]  ;;  %v395_v46 = vld [vmem:[%s1244_s3 + $0xd8] sm:$0xff]  ;;  %s499_s18 = ssub.s32 (%p1058_p4), 5, %s1072_s8  ;;  %s737_s29 = smul.u32 (%p1058_p4), 24, %s1046_s21 }
  0x14   : > { %s720_s28 = sshll.u32 %s233_s9, 3  ;;  %v805_v47 = vpack.c.bf16 %v377_v44, %v376_v43  ;;  %v807_v48 = vpack.c.bf16 %v395_v46, %v394_v45  ;;  %v378_v49 = vld [vmem:[%s1244_s3 + $0x50] sm:$0xff]  ;;  %v379_v50 = vld [vmem:[%s1244_s3 + $0x58] sm:$0xff]  ;;  %v396_v51 = vld [vmem:[%s1244_s3 + $0xe0] sm:$0xff]  ;;  %p500_p8 = scmp.lt.s32.totalorder (%p1058_p4), %s499_s18, 3 }
  0x15   : > { %s235_s6 = scalar_lea.vmem %s1241_s0, %s720_s28  ;;  %794 = vmatpush3.bf16.msra.mxu1 %v793_v26  ;;  %v397_v52 = vld [vmem:[%s1244_s3 + $0xe8] sm:$0xff]  ;;  %v809_v53 = vpack.c.bf16 %v379_v50, %v378_v49  ;;  %v380_v55 = vld [vmem:[%s1244_s3 + $0x60] sm:$0xff]  ;;  %v398_v58 = vld [vmem:[%s1244_s3 + $0xf0] sm:$0xff]  ;;  %s1200_s28 = scalar_lea.vmem [#allocation2], %s819_s23  }
  0x16   : > { %v246_v27 = vld [vmem:[%s235_s6] sm:$0xff]  ;;  %v247_v34 = vld [vmem:[%s235_s6 + $0x8] sm:$0xff]  ;;  %796 = vmatprep.subr.bf16.mxu1 %v795_v28  ;;  %v248_v41 = vld [vmem:[%s235_s6 + $0x10] sm:$0xff]  ;;  %v811_v54 = vpack.c.bf16 %v397_v52, %v396_v51  ;;  %s1212_s10 = scalar_lea.vmem (%p1058_p4), %s1246_s5, %s737_s29  }
  0x17   : > { %721 = vmatmul.mubr.msk.f32.vlgmr.msra.gmra.mrb[0].mxu0 %vm269_vm0, %v246_v27  ;;  %v381_v56 = vld [vmem:[%s1244_s3 + $0x68] sm:$0xff]  ;;  %v399_v59 = vld [vmem:[%s1244_s3 + $0xf8] sm:$0xff]  ;;  %v382_v61 = vld [vmem:[%s1244_s3 + $0x70] sm:$0xff] }
  0x18   : > { %349 = vmatprep.mubr.f32.mxu0 %v1002_v7  ;;  %v813_v57 = vpack.c.bf16 %v381_v56, %v380_v55  ;;  %v815_v60 = vpack.c.bf16 %v399_v59, %v398_v58  ;;  %v383_v62 = vld [vmem:[%s1244_s3 + $0x78] sm:$0xff]  ;;  %v257_v3 = vld [vmem:[%s1243_s2] sm:$0x3] }
  0x19   : > { %798 = vmatpush3.bf16.msra.mxu1 %v797_v33  ;;  %v817_v63 = vpack.c.bf16 %v383_v62, %v382_v61  ;;  %v262_v5 = vrot.slane %v257_v3, %v261_v2  ;;  %v266_v6 = vrot.slane %v257_v3, %v265_v4  ;;  %v724_v26 = vld [vmem:[%s1245_s4] ss:$0 sm:$0xff] }
  0x1a   : > { %800 = vmatprep.subr.bf16.mxu1 %v799_v35 }
  0x1b   : > { %722 = vmatmul.mubr.msk.f32.gmra.mrb[2].mxu0 %vm269_vm0, %v247_v34 }
  0x1c   : > { %355 = vmatprep.mubr.f32.mxu0 %v1002_v7 }
  0x1d   : > { %802 = vmatpush3.bf16.msra.mxu1 %v801_v40 }
  0x1e   : > { %804 = vmatprep.subr.bf16.mxu1 %v803_v42 }
  0x1f   : > { %723 = vmatmul.mubr.msk.f32.gmra.mrb[4].mxu0 %vm269_vm0, %v248_v41 }
  0x21   : > { %806 = vmatpush3.bf16.msra.mxu1 %v805_v47 }
  0x22   : > { %808 = vmatprep.subr.bf16.mxu1 %v807_v48 }
  0x25   : > { %810 = vmatpush3.bf16.msra.mxu1 %v809_v53 }
  0x26   : > { %812 = vmatprep.subr.bf16.mxu1 %v811_v54 }
  0x29   : > { %814 = vmatpush3.bf16.msra.mxu1 %v813_v57 }
  0x2a   : > { %816 = vmatprep.subr.bf16.mxu1 %v815_v60 }
  0x2d   : > { %818 = vmatpush3.bf16.msra.mxu1 %v817_v63 }
  0xea   : > { %v345_v7 = vpop.f32.mrb[0].mxu0 }
  0xeb   : > { %v346_v8 = vadd.f32 %v345_v7, %v262_v5  ;;  %v347_v9 = vpop.f32.mrb[1].mxu0 }
  0xec   : > { %v348_v10 = vadd.f32 %v347_v9, %v266_v6 }
  0xed   : > { %v362_v13 = vmax.f32 %v346_v8, 0.0 }
  0xee   : > { %v351_v11 = vpop.f32.mrb[2].mxu0  ;;  %v363_v12 = vmax.f32 %v348_v10, 0.0 }
  0xef   : > { %v352_v14 = vadd.f32 %v351_v11, %v262_v5  ;;  %v353_v15 = vpop.f32.mrb[3].mxu0 }
  0xf0   : > { %v354_v16 = vadd.f32 %v353_v15, %v266_v6  ;;  %471 = vmatprep.mubr.f32.mxu1 %v363_v12 }
  0xf1   : > { %472 = vmatmul.mubr.f32.vlgmr.msra.gmra.mrb[0].mxu1 %v362_v13  ;;  %v364_v19 = vmax.f32 %v352_v14, 0.0 }
  0xf2   : > { %v365_v17 = vmax.f32 %v354_v16, 0.0  ;;  %v357_v18 = vpop.f32.mrb[4].mxu0 }
  0xf3   : > { %v358_v20 = vadd.f32 %v357_v18, %v262_v5  ;;  %v359_v21 = vpop.f32.mrb[5].mxu0 }
  0xf4   : > { %v360_v22 = vadd.f32 %v359_v21, %v266_v6  ;;  %476 = vmatprep.mubr.f32.mxu1 %v365_v17 }
  0xf5   : > { %477 = vmatmul.mubr.f32.gmra.mrb[2].mxu1 %v364_v19  ;;  %v366_v24 = vmax.f32 %v358_v20, 0.0 }
  0xf6   : > { %v367_v23 = vmax.f32 %v360_v22, 0.0 }
  0xf8   : > { %481 = vmatprep.mubr.f32.mxu1 %v367_v23 }
  0xf9   : > { %482 = vmatmul.mubr.f32.gmra.mrb[4].mxu1 %v366_v24 }
 0x1c4   : > { %v770_v25 = vpop.f32.mrb[0].mxu1 }
 0x1c5   : > { %v771_v27 = vpop.f32.mrb[1].mxu1 }
 0x1c6   : > { %v772_v28 = vadd.f32 %v771_v27, %v770_v25 }
 0x1c8   : > { %v474_v29 = vadd.f32 %v772_v28, %v724_v26  ;;  %v773_v30 = vpop.f32.mrb[2].mxu1 }
 0x1c9   : > { %v774_v31 = vpop.f32.mrb[3].mxu1 }
 0x1ca   : > { %488 = vst.msk [vmem:[%s1200_s28] sm:$0xff] %vm487_vm1, %v474_v29  ;;  %v775_v32 = vadd.f32 %v774_v31, %v773_v30 }
 0x1cc   : > { %v479_v33 = vadd.f32 %v775_v32, %v724_v26  ;;  %v776_v34 = vpop.f32.mrb[4].mxu1  ;;  %497 = sbr.rel (!%p1058_p4) target bundleno = 528 (0x210), region = 44 }
 0x1cd   : > { %v777_v35 = vpop.f32.mrb[5].mxu1 }
 0x1ce   : > { %489 = vst.msk [vmem:[%s1200_s28 + $0x8] sm:$0xff] %vm487_vm1, %v479_v33  ;;  %v778_v36 = vadd.f32 %v777_v35, %v776_v34 }
 0x1d0   : > { %v484_v37 = vadd.f32 %v778_v36, %v724_v26 }
 0x1d2   : > { %490 = vst.msk [vmem:[%s1200_s28 + $0x10] sm:$0xff] %vm487_vm1, %v484_v37 }
 0x1d3   : > { %s1252_s18 = smov (!%p500_p8, %s499_s18), 3 }
 0x1d4   : > { %s725_s11 = sshll.u32 %s1252_s18, 7 }
 0x1d5   : > { %p728_p9 = scmp.eq.s32.totalorder %s725_s11, 0 }
 0x1d6   : > { %910 = sdivrem.u32 (!%p728_p9), %s1252_s18, 3 }
 0x1d7   : > { %508 = sbr.rel (%p728_p9) target bundleno = 528 (0x210), region = 48 }
 0x1df   : > { %s1218_s26 = spop.drf %910 }
 0x1e0   : > { %p729_p10 = scmp.le.s32.totalorder %s1218_s26, 0 }
 0x1e1   : > { %s970_s21 = smov (!%p729_p10), %s1212_s10   ;;  %s974_s8 = smov (!%p729_p10), %s1200_s28  }
 0x1e2   : > { %672 = sbr.rel (%p729_p10) target bundleno = 499 (0x1f3), region = 124  ;;  %s978_s12 = smov (!%p729_p10), 0  }
 0x1e3   : > { %s982_s9 = smov (!%p729_p10), 0  }
 0x1e9 LB: >> { %v576_v38 = vld [vmem:[%s976_s8] sm:$0xff]  ;;  %v578_v39 = vld [vmem:[%s976_s8 + $0x8] sm:$0xff]  ;;  %v580_v40 = vld [vmem:[%s976_s8 + $0x10] sm:$0xff]  ;;  %s582_s13 = sadd.s32 1, %s980_s12  ;;  %s570_s9 = sadd.s32 1, %s984_s9   ;;  %s984_s9 = sphi %s982_s9, %s570_s9   ;;  %s980_s12 = sphi %s978_s12, %s979_s12   ;;  %s976_s8 = sphi %s974_s8, %s587_s8   ;;  %s972_s21 = sphi %s970_s21, %s588_s21  }
 0x1ea   : >> { %577 = vst [vmem:[%s972_s21] sm:$0xff] %v576_v38  ;;  %579 = vst [vmem:[%s972_s21 + $0x8] sm:$0xff] %v578_v39  ;;  %p583_p11 = scmp.ge.s32.totalorder %s582_s13, %s1218_s26  ;;  %p569_p12 = scmp.ge.s32.totalorder %s570_s9, %s1218_s26 }
 0x1eb   : >> { %581 = vst [vmem:[%s972_s21 + $0x10] sm:$0xff] %v580_v40 }
 0x1ec   : >> { %s1254_s13 = smov (%p583_p11, %s582_s13), 0  ;;  %572 = sbr.rel (!%p569_p12) target bundleno = 489 (0x1e9), region = 130 }
 0x1ed   : >> { %s585_s14 = smul.u32 24, %s1254_s13  ;;  %s979_s12 = smov %s1254_s13  }
 0x1ef   : >> { %s587_s8 = scalar_lea.vmem %s1200_s28, %s585_s14 [#allocation2]   ;;  %s588_s21 = scalar_lea.vmem %s1212_s10, %s585_s14  }
 0x1f3 PF: > { %912 = sdivrem.u32 %s1252_s18, 3 }
 0x1f4   : > { %s730_s6 = smul.u32 24, %s1218_s26 }
 0x1f6   : > { %s593_s15 = scalar_lea.vmem %s1200_s28, %s730_s6 [#allocation2]   ;;  %s595_s16 = scalar_lea.vmem %s1212_s10, %s730_s6  }
 0x1fc   : > { %s913_s17 = spop.drf %912 }
 0x1fd   : > { %p732_p13 = scmp.le.s32.totalorder %s913_s17, 0 }
 0x1fe   : > { %s986_s20 = smov (!%p732_p13), %s595_s16   ;;  %s990_s23 = smov (!%p732_p13), %s593_s15  }
 0x1ff   : > { %686 = sbr.rel (%p732_p13) target bundleno = 528 (0x210), region = 135  ;;  %s994_s24 = smov (!%p732_p13), 0  }
 0x200   : > { %s998_s27 = smov (!%p732_p13), 0  }
 0x206 LB: >> { %v605_v41 = vld [vmem:[%s992_s23] sm:$0xff]  ;;  %s607_s29 = sadd.s32 1, %s996_s24  ;;  %s599_s27 = sadd.s32 1, %s1000_s27   ;;  %s1000_s27 = sphi %s998_s27, %s599_s27   ;;  %s996_s24 = sphi %s994_s24, %s995_s24   ;;  %s992_s23 = sphi %s990_s23, %s612_s23   ;;  %s988_s20 = sphi %s986_s20, %s613_s20  }
 0x207   : >> { %606 = vst [vmem:[%s988_s20] sm:$0xff] %v605_v41  ;;  %p608_p0 = scmp.ge.s32.totalorder %s607_s29, %s913_s17  ;;  %p598_p1 = scmp.ge.s32.totalorder %s599_s27, %s913_s17 }
 0x209   : >> { %s1256_s29 = smov (%p608_p0, %s607_s29), 0  ;;  %601 = sbr.rel (!%p598_p1) target bundleno = 518 (0x206), region = 141 }
 0x20a   : >> { %s733_s28 = sshll.u32 %s1256_s29, 3  ;;  %s995_s24 = smov %s1256_s29  }
 0x20b   : >> { %s612_s23 = scalar_lea.vmem %s593_s15, %s733_s28 [#allocation2]   ;;  %s613_s20 = scalar_lea.vmem %s595_s16, %s733_s28  }
 0x210 PF: > { %p12_p2 = scmp.ge.s32.totalorder %s1048_s22, 4   ;;  %s1248_s18 = smov %s964_s19 }
 0x211   : > { %s1249_s19 = smov %s1056_s25  ;;  %s1250_s20 = smov %s1048_s22 }
 0x212   :  { %14 = sbr.rel (!%p12_p2) target bundleno = 2 (0x2), region = 152 }

</bundles_post_ra>
